<compile_context>
chip_gen: v5e
topology: v5e:2x2
jax: 0.10.0
libtpu: 0.0.40
codegen_flags: <defaults>
</compile_context>

<pallas_src>
import functools

import jax
import jax.numpy as jnp
from jax.experimental import pallas as pl
from jax.experimental.pallas import tpu as pltpu


def _round_up(x: int, m: int) -> int:
    return ((x + m - 1) // m) * m


def _attention_kernel(ctx_ref, cmt_ref, w_ref, b_ref, out_ref, *, mxu_precision):
    # ctx_ref : (tile_s, H_in)   context rows, native (B, S, H) layout, full-H lanes
    # cmt_ref : (H_out, tile_s)  comment block, native (B, H, S) layout
    # w_ref   : (H_out, H_in)    PyTorch Linear weight, resident across the grid
    # b_ref   : (H_out, 1)       bias column, resident
    # out_ref : (H_out, tile_s)
    #
    # proj_t[o, s] = sum_h W[o, h] * ctx[s, h]  ->  (H_out, tile_s)
    # (the (0,2,1) permute of the PyTorch module is folded into these
    #  contraction dims, so no transpose of the activation is needed).
    proj_t = jax.lax.dot_general(
        w_ref[...], ctx_ref[...],
        dimension_numbers=(((1,), (1,)), ((), ())),     # contract over H_in
        preferred_element_type=jnp.float32,             # f32 MXU accumulation
        precision=mxu_precision,
    )
    attn_t = jnp.tanh(proj_t + b_ref[...].astype(jnp.float32))     # EUP tanh, f32
    cmt = cmt_ref[...].astype(jnp.float32)
    out_ref[...] = (attn_t * cmt).astype(out_ref.dtype)


def _choose_tile_s(S: int, B: int, tile_s_max: int) -> int:
    """Pick the S tile: full S when it fits (no remainder, no lane constraint),
    else a 128-multiple minimising remainder padding.  When B == 1 and S is
    large enough, split S so the 'parallel' grid has >= 2 steps (v7x 2 TCs)."""
    if S <= tile_s_max:
        if B == 1 and S >= 256:
            return _round_up(pl.cdiv(S, 2), 128)
        return S
    n_tiles = pl.cdiv(S, tile_s_max)
    return _round_up(pl.cdiv(S, n_tiles), 128)


def attention_layer(comment_vector, context_vector, weight, bias,
                    *, tile_s_max=1024, use_bf16_matmul=False):
    """comment_vector: (B, H, S), context_vector: (B, S, H) -> (B, H, S).

    weight / bias follow the PyTorch nn.Linear convention:
    weight is (out_features, in_features), y = x @ weight.T + bias.
    """
    B, S, H = context_vector.shape
    assert comment_vector.shape == (B, H, S)
    assert weight.shape == (H, H)
    assert bias.shape == (H,)

    tile_s = _choose_tile_s(S, B, tile_s_max)
    n_s_tiles = pl.cdiv(S, tile_s)

    # Tiny parameter prep only; the big activation tensors are untouched in HBM.
    b_col = bias.reshape(H, 1)

    if use_bf16_matmul:
        # bf16 MXU operands (v6e / v7x): halves ctx & weight HBM bytes; f32
        # accumulation and f32 elementwise math are kept.  Off by default to
        # hold the 1e-5 tolerance vs the f32 reference.
        context_vector = context_vector.astype(jnp.bfloat16)
        weight = weight.astype(jnp.bfloat16)
        mxu_precision = jax.lax.Precision.DEFAULT
    else:
        mxu_precision = jax.lax.Precision.HIGHEST   # match PyTorch f32 Linear

    out_dtype = comment_vector.dtype

    # Explicit scoped-VMEM budget: double-buffered activation tiles + resident
    # params + margin, clamped to stay within every generation's physical VMEM
    # (v7x: 64 MiB, v5e scoped default: 16 MiB).
    # TODO(synk): for very large H (>= ~1.5k f32) the resident (H, H) weight
    # should be tiled along the output-feature axis instead of kept whole.
    isz = lambda a: jnp.dtype(a.dtype).itemsize
    act_bytes = tile_s * H * (isz(context_vector) + isz(comment_vector)
                              + jnp.dtype(out_dtype).itemsize)
    param_bytes = H * H * isz(weight) + H * isz(bias)
    vmem_limit = int(min(max(2 * act_bytes + 2 * param_bytes + (4 << 20),
                             16 << 20), 64 << 20))

    kernel = functools.partial(_attention_kernel, mxu_precision=mxu_precision)

    return pl.pallas_call(
        kernel,
        out_shape=jax.ShapeDtypeStruct((B, H, S), out_dtype),
        grid_spec=pltpu.PrefetchScalarGridSpec(
            num_scalar_prefetch=0,
            grid=(B, n_s_tiles),
            in_specs=[
                # context rows, native (B, S, H) layout, full-H lane dim
                pl.BlockSpec((None, tile_s, H), lambda b, s: (b, s, 0)),
                # comment block, native (B, H, S) layout
                pl.BlockSpec((None, H, tile_s), lambda b, s: (b, 0, s)),
                # PyTorch weight (H_out, H_in), resident (constant index map)
                pl.BlockSpec((H, H), lambda b, s: (0, 0)),
                # bias column (H, 1), resident
                pl.BlockSpec((H, 1), lambda b, s: (0, 0)),
            ],
            out_specs=pl.BlockSpec((None, H, tile_s), lambda b, s: (b, 0, s)),
        ),
        compiler_params=pltpu.CompilerParams(
            dimension_semantics=("parallel", "parallel"),
            vmem_limit_bytes=vmem_limit,
        ),
    )(context_vector, comment_vector, weight, b_col)


def attention_layer_ref(comment_vector, context_vector, weight, bias):
    # Pure-JAX reference mirroring the PyTorch module (f32, HIGHEST precision).
    attn = jnp.tanh(
        jnp.einsum("bsh,oh->bso", context_vector, weight,
                   precision=jax.lax.Precision.HIGHEST) + bias)
    return jnp.transpose(attn, (0, 2, 1)) * comment_vector


if __name__ == "__main__":
    B, S, H = 2, 8, 32   # batch, seq, hidden_dim

    key = jax.random.PRNGKey(0)
    k_ctx, k_cmt, k_w, k_b = jax.random.split(key, 4)

    context_vector = jax.random.normal(k_ctx, (B, S, H), dtype=jnp.float32)
    comment_vector = jax.random.normal(k_cmt, (B, H, S), dtype=jnp.float32)

    # Deterministic Linear(hidden_dim, hidden_dim) parameters (PyTorch layout).
    weight = jax.random.normal(k_w, (H, H), dtype=jnp.float32) * 0.1
    bias = jax.random.normal(k_b, (H,), dtype=jnp.float32) * 0.1

    out = attention_layer(comment_vector, context_vector, weight, bias)
    out = jax.block_until_ready(out)

    ref = attention_layer_ref(comment_vector, context_vector, weight, bias)
    assert out.shape == (B, H, S)
    assert jnp.allclose(out, ref, atol=1e-5, rtol=1e-5), "mismatch vs reference"

    print("KERNEL_OK")
</pallas_src>

<mosaic_0001>
module attributes {stable_mosaic.version = 11 : i64} {
  func.func @_attention_kernel(%arg0: i32, %arg1: i32, %arg2: memref<1x8x32xf32, #tpu.memory_space<vmem>>, %arg3: memref<1x32x8xf32, #tpu.memory_space<vmem>>, %arg4: memref<32x32xf32, #tpu.memory_space<vmem>>, %arg5: memref<32x1xf32, #tpu.memory_space<vmem>>, %arg6: memref<1x32x8xf32, #tpu.memory_space<vmem>>) attributes {dimension_semantics = [#tpu.dimension_semantics<parallel>, #tpu.dimension_semantics<parallel>], iteration_bounds = array<i64: 2, 1>, scalar_prefetch = 0 : i64, scratch_operands = 0 : i64, tpu.core_type = #tpu.core_type<tc>, window_params = [{transform_indices = @transform_0, window_bounds = array<i64: 1, 8, 32>}, {transform_indices = @transform_1, window_bounds = array<i64: 1, 32, 8>}, {pipeline_mode = #tpu.pipeline_mode<synchronous>, transform_indices = @transform_2, window_bounds = array<i64: 32, 32>}, {pipeline_mode = #tpu.pipeline_mode<synchronous>, transform_indices = @transform_3, window_bounds = array<i64: 32, 1>}, {transform_indices = @transform_4, window_bounds = array<i64: 1, 32, 8>}]} {
    %c0 = arith.constant 0 : index
    %c0_0 = arith.constant 0 : index
    %0 = vector.load %arg4[%c0, %c0_0] : memref<32x32xf32, #tpu.memory_space<vmem>>, vector<32x32xf32>
    %c0_1 = arith.constant 0 : index
    %c0_2 = arith.constant 0 : index
    %c0_3 = arith.constant 0 : index
    %1 = vector.load %arg2[%c0_1, %c0_2, %c0_3] : memref<1x8x32xf32, #tpu.memory_space<vmem>>, vector<1x8x32xf32>
    %2 = vector.shape_cast %1 : vector<1x8x32xf32> to vector<8x32xf32>
    %cst = arith.constant dense<0.000000e+00> : vector<32x8xf32>
    %3 = tpu.matmul %0, %2, %cst {dimension_numbers = #tpu.dot_dimension_numbers<[1], [1], [0], [0], [0, 0, 1, 0], [], []>, precision = #tpu.contract_precision<fp32>} : vector<32x32xf32>, vector<8x32xf32>, vector<32x8xf32> -> vector<32x8xf32>
    %c0_4 = arith.constant 0 : index
    %c0_5 = arith.constant 0 : index
    %4 = vector.load %arg5[%c0_4, %c0_5] : memref<32x1xf32, #tpu.memory_space<vmem>>, vector<32x1xf32>
    %5 = vector.broadcast %4 : vector<32x1xf32> to vector<32x8xf32>
    %6 = arith.addf %3, %5 : vector<32x8xf32>
    %7 = math.tanh %6 : vector<32x8xf32>
    %c0_6 = arith.constant 0 : index
    %c0_7 = arith.constant 0 : index
    %c0_8 = arith.constant 0 : index
    %8 = vector.load %arg3[%c0_6, %c0_7, %c0_8] : memref<1x32x8xf32, #tpu.memory_space<vmem>>, vector<1x32x8xf32>
    %9 = vector.shape_cast %8 : vector<1x32x8xf32> to vector<32x8xf32>
    %10 = arith.mulf %7, %9 : vector<32x8xf32>
    %c0_9 = arith.constant 0 : index
    %c0_10 = arith.constant 0 : index
    %c0_11 = arith.constant 0 : index
    %11 = vector.load %arg6[%c0_9, %c0_10, %c0_11] : memref<1x32x8xf32, #tpu.memory_space<vmem>>, vector<1x32x8xf32>
    %12 = vector.shape_cast %11 : vector<1x32x8xf32> to vector<32x8xf32>
    %13 = vector.shape_cast %10 : vector<32x8xf32> to vector<1x32x8xf32>
    tpu.vector_store %arg6[%c0_9, %c0_10, %c0_11], %13 {strides = array<i32>} : memref<1x32x8xf32, #tpu.memory_space<vmem>>, vector<1x32x8xf32>,
    return
  }
  func.func @transform_0(%arg0: i32, %arg1: i32) -> (i32, i32, i32) {
    %c0_i32 = arith.constant 0 : i32
    %c0_i32_0 = arith.constant 0 : i32
    return %arg0, %arg1, %c0_i32 : i32, i32, i32
  }
  func.func @transform_1(%arg0: i32, %arg1: i32) -> (i32, i32, i32) {
    %c0_i32 = arith.constant 0 : i32
    %c0_i32_0 = arith.constant 0 : i32
    return %arg0, %c0_i32, %arg1 : i32, i32, i32
  }
  func.func @transform_2(%arg0: i32, %arg1: i32) -> (i32, i32) {
    %c0_i32 = arith.constant 0 : i32
    %c0_i32_0 = arith.constant 0 : i32
    %c0_i32_1 = arith.constant 0 : i32
    return %c0_i32, %c0_i32_0 : i32, i32
  }
  func.func @transform_3(%arg0: i32, %arg1: i32) -> (i32, i32) {
    %c0_i32 = arith.constant 0 : i32
    %c0_i32_0 = arith.constant 0 : i32
    %c0_i32_1 = arith.constant 0 : i32
    return %c0_i32, %c0_i32_0 : i32, i32
  }
  func.func @transform_4(%arg0: i32, %arg1: i32) -> (i32, i32, i32) {
    %c0_i32 = arith.constant 0 : i32
    %c0_i32_0 = arith.constant 0 : i32
    return %arg0, %c0_i32, %arg1 : i32, i32, i32
  }
}

</mosaic_0001>

<bundles_post_ra>
// kernel: tpu_custom_call.1
= control target key start
LH: loop header
LB: loop body
LE: loop exit
PB: predicated region body
PF: predicated region fallthrough
CT: control target
= control target key end

     0   :  { %s757_s15 = smov 0   ;;  %s759_s16 = smov 0   ;;  %s854_s0 = inlined_call_operand.vmem [shape: f32[2,8,32], index: 0, kind: input, shape index: {}]   ;;  %s855_s1 = inlined_call_operand.vmem [shape: f32[2,32,8], index: 1, kind: input, shape index: {}]   ;;  %s856_s2 = inlined_call_operand.vmem [shape: f32[32,32], index: 2, kind: input, shape index: {}]   ;;  %s857_s3 = inlined_call_operand.vmem [shape: f32[32,1], index: 3, kind: input, shape index: {}]   ;;  %s858_s4 = inlined_call_operand.vmem [shape: f32[2,32,8], index: 4, kind: output, shape index: {}]  }
   0x1   :  { %s761_s17 = smov 0  }
   0x2 LB: > { %s26_s18 = sadd.s32 1, %s725_s16  ;;  %p660_p0 = scmp.ge.s32.totalorder %s729_s17, 1  ;;  %s729_s17 = sphi %s761_s17, %s14_s17   ;;  %s725_s16 = sphi %s759_s16, %s860_s16   ;;  %s721_s15 = sphi %s757_s15, %s859_s15  }
   0x3   : > { %p28_p1 = scmp.ge.s32.totalorder %s26_s18, 2  ;;  %p195_p2 = scmp.lt.s32.totalorder %s729_s17, 3 }
   0x5   : > { %s862_s18 = smov (%p28_p1, %s26_s18), 0  ;;  %p196_p3 = pnand %p660_p0, %p195_p2 }
   0x6   : > { %p234_p4 = scmp.lt.s32.totalorder (!%p196_p3), %s721_s15, 1 }
   0x7   : > { %199 = sbr.rel (%p196_p3) target bundleno = 218 (0xda), region = 36 }
   0xc   : > { %vm286_vm0 = vcmask 261120   ;;  %v259_v0 = vld [vmem:[%s856_s2 + $0x10] sm:$0xff]  ;;  %v260_v1 = vld [vmem:[%s856_s2 + $0x18] sm:$0xff]  ;;  %v257_v2 = vld [vmem:[%s856_s2] sm:$0xff]  ;;  %v731_v6 = vmov 0   ;;  %s864_s15 = smov (!%p234_p4, %s721_s15), 1 }
   0xd   : > { %v294_v3 = vsel %vm286_vm0, %v259_v0, 0  ;;  %v297_v4 = vsel %vm286_vm0, %v260_v1, 0  ;;  %v288_v5 = vsel %vm286_vm0, %v257_v2, 0  ;;  %698 = vset.pattern.permute.xlu1 %v731_v6  ;;  %v264_v7 = vld [vmem:[%s857_s3 + $0x10] sm:$0xff]  ;;  %v258_v8 = vld [vmem:[%s856_s2 + $0x8] sm:$0xff]  ;;  %697 = vset.pattern.permute.xlu0 %v731_v6  ;;  %s661_s29 = sshll.u32 %s864_s15, 3 }
   0xe   : > { %v795_v9 = vand.u32 4294901760, %v294_v3  ;;  %v797_v10 = vand.u32 4294901760, %v297_v4  ;;  %v319_v11 = vand.u32 4294901760, %v288_v5  ;;  %278 = vperm.xlu1 %698, %v264_v7   ;;  %v291_v12 = vsel %vm286_vm0, %v258_v8, 0  ;;  %s240_s6 = scalar_lea.vmem %s854_s0, %s661_s29  ;;  %v262_v17 = vld [vmem:[%s857_s3] sm:$0xff]  ;;  %v265_v26 = vld [vmem:[%s857_s3 + $0x18] sm:$0xff] }
   0xf   : > { %v327_v13 = vand.u32 4294901760, %v291_v12  ;;  %v261_v18 = vld [vmem:[%s240_s6] sm:$0xff]  ;;  %268 = vperm.xlu0 %697, %v262_v17   ;;  %v263_v34 = vld [vmem:[%s857_s3 + $0x8] sm:$0xff]  ;;  %s668_s13 = sshll.u32 %s864_s15, 5  ;;  %vm553_vm1 = vcmask 64512  }
  0x10   : > { %v336_v14 = vsub.f32 %v294_v3, %v795_v9  ;;  %v320_v15 = vsub.f32 %v288_v5, %v319_v11  ;;  %v344_v16 = vsub.f32 %v297_v4, %v797_v10  ;;  %v300_v22 = vsel %vm286_vm0, %v261_v18, 0  ;;  %s826_s20 = scalar_lea.vmem %s855_s1, %s668_s13  ;;  %s832_s22 = scalar_lea.vmem %s858_s4, %s668_s13 }
  0x11   : > { %v328_v21 = vsub.f32 %v291_v12, %v327_v13  ;;  %v317_v23 = vand.u32 4294901760, %v300_v22  ;;  %v545_v7 = vld [vmem:[%s826_s20] sm:$0xff] }
  0x12   : > { %v337_v19 = vand.u32 4294901760, %v336_v14  ;;  %v321_v20 = vand.u32 4294901760, %v320_v15  ;;  %v345_v27 = vand.u32 4294901760, %v344_v16 }
  0x13   : > { %670 = vmatpush.xpose.msra.mxu2 %v317_v23  ;;  %v368_v29 = vsub.f32 %v300_v22, %v317_v23  ;;  %318 = vmatpush.xpose.msra.mxu0 %v317_v23  ;;  %v329_v31 = vand.u32 4294901760, %v328_v21 }
  0x14   : > { %v338_v24 = vsub.f32 %v336_v14, %v337_v19  ;;  %v322_v25 = vsub.f32 %v320_v15, %v321_v20  ;;  %v346_v33 = vsub.f32 %v344_v16, %v345_v27 }
  0x15   : > { %v369_v32 = vand.u32 4294901760, %v368_v29  ;;  %v330_v36 = vsub.f32 %v328_v21, %v329_v31 }
  0x16   : > { %v339_v28 = vand.u32 4294901760, %v338_v24  ;;  %v323_v30 = vand.u32 4294901760, %v322_v25  ;;  %283 = vperm.xlu1 %698, %v265_v26   ;;  %v347_v38 = vand.u32 4294901760, %v346_v33 }
  0x17   : > { %407 = vmatpush.xpose.msrb.mxu2 %v368_v29  ;;  %v370_v35 = vsub.f32 %v368_v29, %v369_v32  ;;  %489 = vmatpush.xpose.msrb.mxu0 %v369_v32  ;;  %v331_v39 = vand.u32 4294901760, %v330_v36  ;;  %v547_v32 = vld [vmem:[%s826_s20 + $0x10] sm:$0xff] }
  0x18   : > { %340 = vmatmul.f32.vlgmr.msra.gmra.mxu2 %v339_v28  ;;  %324 = vmatmul.f32.vlgmr.msra.gmra.mxu0 %v323_v30 }
  0x19   : > { %273 = vperm.xlu0 %697, %v263_v34   ;;  %v371_v37 = vand.u32 4294901760, %v370_v35 }
  0x1b   : > { %671 = vmatpush.xpose.msra.mxu3 %v371_v37  ;;  %372 = vmatpush.xpose.msra.mxu1 %v371_v37  ;;  %v548_v37 = vld [vmem:[%s826_s20 + $0x18] sm:$0xff] }
  0x1e   : > { %382 = vmatmul.f32.vlgmr.msra.gmra.mxu3 %v795_v9  ;;  %374 = vmatmul.f32.vlgmr.msra.gmra.mxu1 %v319_v11 }
  0x1f   : > { %445 = vmatpush.xpose.msrb.mxu3 %v317_v23  ;;  %523 = vmatpush.xpose.msrb.mxu1 %v317_v23 }
  0x20   : > { %348 = vmatmul.f32.gmra.mxu2 %v347_v38  ;;  %332 = vmatmul.f32.gmra.mxu0 %v331_v39 }
  0x26   : > { %386 = vmatmul.f32.gmra.mxu3 %v797_v10  ;;  %378 = vmatmul.f32.gmra.mxu1 %v327_v13 }
  0x28   : > { %410 = vmatmul.f32.vlgmr.msrb.gmra.mxu2 %v320_v15  ;;  %491 = vmatmul.f32.vlgmr.msrb.gmra.mxu0 %v319_v11 }
  0x2e   : > { %449 = vmatmul.f32.vlgmr.msrb.gmra.mxu3 %v321_v20  ;;  %525 = vmatmul.f32.vlgmr.msrb.gmra.mxu1 %v319_v11  ;;  %v546_v20 = vld [vmem:[%s826_s20 + $0x8] sm:$0xff] }
  0x30   : > { %415 = vmatmul.f32.gmra.mxu2 %v328_v21  ;;  %495 = vmatmul.f32.gmra.mxu0 %v327_v13 }
  0x36   : > { %455 = vmatmul.f32.gmra.mxu3 %v329_v31  ;;  %529 = vmatmul.f32.gmra.mxu1 %v327_v13 }
  0x38   : > { %420 = vmatmul.f32.gmra.mxu2 %v336_v14  ;;  %499 = vmatmul.f32.gmra.mxu0 %v795_v9 }
  0x3e   : > { %461 = vmatmul.f32.gmra.mxu3 %v337_v19  ;;  %533 = vmatmul.f32.gmra.mxu1 %v795_v9 }
  0x40   : > { %425 = vmatmul.f32.gmra.mxu2 %v344_v16  ;;  %503 = vmatmul.f32.gmra.mxu0 %v797_v10 }
  0x46   : > { %467 = vmatmul.f32.gmra.mxu3 %v345_v27  ;;  %537 = vmatmul.f32.gmra.mxu1 %v797_v10 }
  0x80   : > { %v279_v61 = vpop.permute.xlu1 %278 }
  0x81   : > { %v269_v47 = vpop.permute.xlu0 %268 }
  0x88   : > { %v284_v12 = vpop.permute.xlu1 %283 }
  0x8b   : > { %v274_v54 = vpop.permute.xlu0 %273 }
  0x95   : > { %v325_v40 = vpop.f32.mrf.mxu0 }
  0x96   : > { %v326_v50 = vadd.f32 %v325_v40, %v269_v47 }
  0x9b   : > { %v341_v41 = vpop.f32.mrf.mxu2  ;;  %v375_v42 = vpop.f32.mrf.mxu1 }
  0x9c   : > { %v376_v53 = vadd.f32 %v375_v42, %v326_v50  ;;  %v342_v4 = vadd.f32 %v341_v41, %v279_v61 }
  0x9d   : > { %v333_v43 = vpop.f32.mrf.mxu0 }
  0x9e   : > { %v334_v58 = vadd.f32 %v333_v43, %v274_v54 }
  0xa1   : > { %v383_v45 = vpop.f32.mrf.mxu3 }
  0xa2   : > { %v384_v10 = vadd.f32 %v383_v45, %v342_v4 }
  0xa3   : > { %v349_v44 = vpop.f32.mrf.mxu2  ;;  %v379_v46 = vpop.f32.mrf.mxu1 }
  0xa4   : > { %v380_v63 = vadd.f32 %v379_v46, %v334_v58  ;;  %v350_v18 = vadd.f32 %v349_v44, %v284_v12 }
  0xa5   : > { %v492_v51 = vpop.f32.mrf.mxu0 }
  0xa9   : > { %v387_v48 = vpop.f32.mrf.mxu3 }
  0xaa   : > { %v388_v24 = vadd.f32 %v387_v48, %v350_v18 }
  0xab   : > { %v411_v49 = vpop.f32.mrf.mxu2  ;;  %v526_v52 = vpop.f32.mrf.mxu1 }
  0xac   : > { %v412_v55 = vadd.f32 %v411_v49, %v376_v53 }
  0xad   : > { %v496_v62 = vpop.f32.mrf.mxu0 }
  0xb1   : > { %v450_v57 = vpop.f32.mrf.mxu3 }
  0xb2   : > { %v451_v59 = vadd.f32 %v450_v57, %v412_v55 }
  0xb3   : > { %v416_v56 = vpop.f32.mrf.mxu2  ;;  %v530_v1 = vpop.f32.mrf.mxu1 }
  0xb4   : > { %v493_v60 = vadd.f32 %v492_v51, %v451_v59  ;;  %v417_v2 = vadd.f32 %v416_v56, %v380_v63 }
  0xb5   : > { %v500_v14 = vpop.f32.mrf.mxu0 }
  0xb6   : > { %v527_v0 = vadd.f32 %v526_v52, %v493_v60 }
  0xb8   : > { %699 = vtanh.f32 %v527_v0 }
  0xb9   : > { %v456_v3 = vpop.f32.mrf.mxu3 }
  0xba   : > { %v457_v5 = vadd.f32 %v456_v3, %v417_v2 }
  0xbb   : > { %v421_v6 = vpop.f32.mrf.mxu2  ;;  %v534_v17 = vpop.f32.mrf.mxu1 }
  0xbc   : > { %v497_v8 = vadd.f32 %v496_v62, %v457_v5  ;;  %v422_v15 = vadd.f32 %v421_v6, %v384_v10 }
  0xbd   : > { %v504_v29 = vpop.f32.mrf.mxu0 }
  0xbe   : > { %v700_v9 = vpop.eup %699  ;;  %v531_v11 = vadd.f32 %v530_v1, %v497_v8 }
  0xbf   : > { %v549_v13 = vmul.f32 %v700_v9, %v545_v7 }
  0xc0   : > { %701 = vtanh.f32 %v531_v11 }
  0xc1   : > { %554 = vst.msk [vmem:[%s832_s22] sm:$0xff] %vm553_vm1, %v549_v13  ;;  %v462_v16 = vpop.f32.mrf.mxu3 }
  0xc2   : > { %v463_v19 = vadd.f32 %v462_v16, %v422_v15 }
  0xc3   : > { %v426_v22 = vpop.f32.mrf.mxu2  ;;  %v538_v31 = vpop.f32.mrf.mxu1 }
  0xc4   : > { %v501_v21 = vadd.f32 %v500_v14, %v463_v19  ;;  %v427_v27 = vadd.f32 %v426_v22, %v388_v24 }
  0xc6   : > { %v702_v23 = vpop.eup %701  ;;  %v535_v25 = vadd.f32 %v534_v17, %v501_v21 }
  0xc7   : > { %v550_v26 = vmul.f32 %v702_v23, %v546_v20 }
  0xc8   : > { %703 = vtanh.f32 %v535_v25 }
  0xc9   : > { %555 = vst.msk [vmem:[%s832_s22 + $0x8] sm:$0xff] %vm553_vm1, %v550_v26  ;;  %v468_v28 = vpop.f32.mrf.mxu3 }
  0xca   : > { %v469_v30 = vadd.f32 %v468_v28, %v427_v27 }
  0xcc   : > { %v505_v33 = vadd.f32 %v504_v29, %v469_v30 }
  0xce   : > { %v704_v34 = vpop.eup %703  ;;  %v539_v35 = vadd.f32 %v538_v31, %v505_v33 }
  0xcf   : > { %v551_v36 = vmul.f32 %v704_v34, %v547_v32 }
  0xd0   : > { %705 = vtanh.f32 %v539_v35 }
  0xd1   : > { %556 = vst.msk [vmem:[%s832_s22 + $0x10] sm:$0xff] %vm553_vm1, %v551_v36 }
  0xd6   : > { %v706_v38 = vpop.eup %705 }
  0xd7   : > { %v552_v39 = vmul.f32 %v706_v38, %v548_v37 }
  0xd9   : > { %557 = vst.msk [vmem:[%s832_s22 + $0x18] sm:$0xff] %vm553_vm1, %v552_v39 }
  0xda PF: > { %s14_s17 = sadd.s32 1, %s729_s17   ;;  %s859_s15 = smov %s725_s16 }
  0xdb   : > { %p11_p5 = scmp.ge.s32.totalorder %s14_s17, 4   ;;  %s860_s16 = smov %s862_s18 }
  0xdd   :  { %13 = sbr.rel (!%p11_p5) target bundleno = 2 (0x2), region = 69 }

</bundles_post_ra>
